<compile_context>
chip_gen: v7x
topology: tpu7x:2x2x1
jax: 0.10.0
libtpu: 0.0.40
codegen_flags: <defaults>
</compile_context>

<pallas_src>
import functools

import jax
import jax.numpy as jnp
from jax.experimental import pallas as pl
from jax.experimental.pallas import tpu as pltpu


def _round_up(x, m):
    return ((x + m - 1) // m) * m


# ------------------------------ patch-embed kernel ------------------------------- #
def patch_embed_kernel(p_ref, w_ref, b_ref, cls_ref, pos_ref, o_ref):
    # p_ref:   (1, P, patch_dim)      patches of one image
    # w_ref:   (patch_dim, D)  bf16   (pre-transposed projection weight)
    # b_ref:   (1, D) f32
    # cls_ref: (1, D) f32
    # pos_ref: (P+1, D) f32
    # o_ref:   (1, S_pad, D)          rows >= P+1 are zero padding
    f32, bf16 = jnp.float32, jnp.bfloat16
    P = p_ref.shape[1]
    S_pad, D = o_ref.shape[1], o_ref.shape[2]

    proj = jnp.dot(p_ref[0].astype(bf16), w_ref[...],
                   preferred_element_type=f32) + b_ref[0]          # (P, D) f32

    o_ref[0, 0:1, :] = (cls_ref[...] + pos_ref[0:1, :]).astype(o_ref.dtype)
    o_ref[0, 1:P + 1, :] = (proj + pos_ref[1:, :]).astype(o_ref.dtype)
    pad_rows = S_pad - (P + 1)
    if pad_rows > 0:                                               # static
        o_ref[0, P + 1:, :] = jnp.zeros((pad_rows, D), o_ref.dtype)


def patch_embed_pallas(patches, ep, *, s_pad):
    N, P, patch_dim = patches.shape
    D = ep["proj_w"].shape[1]
    S = ep["pos"].shape[0]
    return pl.pallas_call(
        patch_embed_kernel,
        out_shape=jax.ShapeDtypeStruct((N, s_pad, D), jnp.float32),
        grid=(N,),
        in_specs=[
            pl.BlockSpec((1, P, patch_dim), lambda n: (n, 0, 0)),
            pl.BlockSpec((patch_dim, D), lambda n: (0, 0)),
            pl.BlockSpec((1, D), lambda n: (0, 0)),
            pl.BlockSpec((1, D), lambda n: (0, 0)),
            pl.BlockSpec((S, D), lambda n: (0, 0)),
        ],
        out_specs=pl.BlockSpec((1, s_pad, D), lambda n: (n, 0, 0)),
        compiler_params=pltpu.CompilerParams(
            dimension_semantics=("parallel",)),
    )(patches, ep["proj_w"], ep["proj_b"], ep["cls"], ep["pos"])


# ------------------------------ fused encoder kernel ------------------------------ #
def encoder_layer_kernel(
    xq_ref,                 # (1, TQ, D)    query-tile rows of the residual stream
    xf_ref,                 # (1, S_pad, D) full (padded) sequence, for K/V
    g1_ref, b1_ref,         # LayerNorm1: (1, D), (1, D)            f32
    wq_ref, bq_ref,         # Q proj (scale folded): (D, D) bf16, (1, D) f32
    wkv_ref, bkv_ref,       # K/V proj: (D, 2D) bf16, (1, 2D) f32
    wo_ref, bo_ref,         # out proj: (D, D) bf16, (1, D) f32
    g2_ref, b2_ref,         # LayerNorm2: (1, D), (1, D)            f32
    w1_ref, b1m_ref,        # MLP fc1: (D, mlp) bf16, (1, mlp) f32
    w2_ref, b2m_ref,        # MLP fc2: (mlp, D) bf16, (1, D) f32
    o_ref,                  # (1, TQ, D)
    attn_scratch,           # VMEM (TQ, D) f32 -- per-head context lands here (no concat)
    *, heads: int, seq_len: int,
):
    f32, bf16 = jnp.float32, jnp.bfloat16
    eps = 1e-5

    xq = xq_ref[0].astype(f32)          # (TQ, D)
    xf = xf_ref[0].astype(f32)          # (S_pad, D)
    TQ, D = xq.shape
    S_pad = xf.shape[0]
    hd = D // heads

    def layernorm(v, g, b):
        mu = jnp.mean(v, axis=-1, keepdims=True)
        var = jnp.mean(jnp.square(v - mu), axis=-1, keepdims=True)
        return (v - mu) * jax.lax.rsqrt(var + eps) * g + b

    # ---- self-attention branch ----
    ln1_q = layernorm(xq, g1_ref[0], b1_ref[0])                      # (TQ, D)
    ln1_f = layernorm(xf, g1_ref[0], b1_ref[0])                      # (S_pad, D)

    # Full-width projections on the MXU (bf16 in, f32 accumulate).
    # 1/sqrt(hd) is already folded into wq/bq.
    q = jnp.dot(ln1_q.astype(bf16), wq_ref[...],
                preferred_element_type=f32) + bq_ref[0]              # (TQ, D)
    kv = jnp.dot(ln1_f.astype(bf16), wkv_ref[...],
                 preferred_element_type=f32) + bkv_ref[0]            # (S_pad, 2D)
    q_b = q.astype(bf16)
    k_b = kv[:, :D].astype(bf16)
    v_b = kv[:, D:].astype(bf16)

    if seq_len < S_pad:     # hoisted key-padding mask (static branch)
        kmask = jax.lax.broadcasted_iota(jnp.int32, (TQ, S_pad), 1) < seq_len

    # Static loop over heads; each head's context is stored to VMEM scratch
    # immediately (removes the lane-axis concatenate of the previous version).
    for h in range(heads):
        lo = h * hd
        qh = q_b[:, lo:lo + hd]                                      # (TQ, hd)
        kh = k_b[:, lo:lo + hd]                                      # (S_pad, hd)
        vh = v_b[:, lo:lo + hd]
        s = jax.lax.dot_general(qh, kh, (((1,), (1,)), ((), ())),
                                preferred_element_type=f32)          # (TQ, S_pad)
        if seq_len < S_pad:
            s = jnp.where(kmask, s, -1e30)
        s = s - jnp.max(s, axis=-1, keepdims=True)
        p = jnp.exp(s)
        p = p * pl.reciprocal(jnp.sum(p, axis=-1, keepdims=True), approx=True)
        attn_scratch[:, lo:lo + hd] = jnp.dot(p.astype(bf16), vh,
                                              preferred_element_type=f32)

    attn = jnp.dot(attn_scratch[...].astype(bf16), wo_ref[...],
                   preferred_element_type=f32) + bo_ref[0]           # (TQ, D)
    x1 = xq + attn                                                   # residual 1

    # ---- MLP branch ----
    ln2 = layernorm(x1, g2_ref[0], b2_ref[0])
    h1 = jnp.dot(ln2.astype(bf16), w1_ref[...],
                 preferred_element_type=f32) + b1m_ref[0]            # (TQ, mlp)
    h1 = jax.nn.gelu(h1, approximate=False)      # exact erf GELU, matches nn.GELU()
    mlp = jnp.dot(h1.astype(bf16), w2_ref[...],
                  preferred_element_type=f32) + b2m_ref[0]           # (TQ, D)

    o_ref[0] = (x1 + mlp).astype(o_ref.dtype)                        # residual 2


def encoder_layer_pallas(x, lp, *, heads, seq_len, tq=128):
    B, S_pad, D = x.shape
    mlp_dim = lp["w1"].shape[1]
    TQ = tq if (S_pad % tq == 0) else S_pad
    NQ = S_pad // TQ

    def full(shape):
        return pl.BlockSpec(shape, lambda b, qi: (0,) * len(shape))

    in_specs = [
        pl.BlockSpec((1, TQ, D), lambda b, qi: (b, qi, 0)),      # x  (query tile)
        pl.BlockSpec((1, S_pad, D), lambda b, qi: (b, 0, 0)),    # x  (full seq for K/V)
        full((1, D)), full((1, D)),                              # ln1
        full((D, D)), full((1, D)),                              # Wq (scale folded), bq
        full((D, 2 * D)), full((1, 2 * D)),                      # Wkv, bkv
        full((D, D)), full((1, D)),                              # Wo, bo
        full((1, D)), full((1, D)),                              # ln2
        full((D, mlp_dim)), full((1, mlp_dim)),                  # fc1
        full((mlp_dim, D)), full((1, D)),                        # fc2
    ]
    out_spec = pl.BlockSpec((1, TQ, D), lambda b, qi: (b, qi, 0))

    args = (x, x,
            lp["ln1_g"], lp["ln1_b"],
            lp["wq"], lp["bq"], lp["wkv"], lp["bkv"],
            lp["wo"], lp["bo"],
            lp["ln2_g"], lp["ln2_b"],
            lp["w1"], lp["b1"], lp["w2"], lp["b2"])

    # VMEM budget: double-buffered input/output blocks + f32 intermediates,
    # capped at 64 MiB so the request is valid on v7x as well.
    itemsize = x.dtype.itemsize
    weight_bytes = sum(int(a.size) * a.dtype.itemsize for a in args[2:])
    xblock_bytes = (2 * TQ * D + S_pad * D) * itemsize
    interm_bytes = 4 * (3 * S_pad * D + 8 * TQ * D + 2 * TQ * S_pad + 2 * TQ * mlp_dim)
    est = 2 * (weight_bytes + xblock_bytes) + interm_bytes + (2 << 20)
    vmem_limit = int(min(64 << 20, max(16 << 20, est)))

    flops = 2 * B * S_pad * D * (4 * D + 2 * mlp_dim) + 4 * B * S_pad * S_pad * D
    transcendentals = B * (heads * S_pad * S_pad + S_pad * mlp_dim + 4 * S_pad)
    bytes_accessed = 3 * B * S_pad * D * itemsize + weight_bytes

    return pl.pallas_call(
        functools.partial(encoder_layer_kernel, heads=heads, seq_len=seq_len),
        out_shape=jax.ShapeDtypeStruct((B, S_pad, D), x.dtype),
        grid=(B, NQ),
        in_specs=in_specs,
        out_specs=out_spec,
        scratch_shapes=[pltpu.VMEM((TQ, D), jnp.float32)],
        compiler_params=pltpu.CompilerParams(
            dimension_semantics=("parallel", "parallel"),
            vmem_limit_bytes=vmem_limit),
        cost_estimate=pl.CostEstimate(
            flops=int(flops),
            transcendentals=int(transcendentals),
            bytes_accessed=int(bytes_accessed)),
    )(*args)


# ----------------------------------- head kernel ---------------------------------- #
def head_kernel(x_ref, g_ref, b_ref, w_ref, bh_ref, o_ref):
    f32, bf16 = jnp.float32, jnp.bfloat16
    eps = 1e-5
    x = x_ref[...].astype(f32)                                       # (N, D)
    mu = jnp.mean(x, axis=-1, keepdims=True)
    var = jnp.mean(jnp.square(x - mu), axis=-1, keepdims=True)
    ln = (x - mu) * jax.lax.rsqrt(var + eps) * g_ref[0] + b_ref[0]
    o = jnp.dot(ln.astype(bf16), w_ref[...],
                preferred_element_type=f32) + bh_ref[0]              # (N, num_classes)
    o_ref[...] = o.astype(o_ref.dtype)


def head_pallas(cls_tok, hp):
    N, D = cls_tok.shape
    NC = hp["w"].shape[1]
    return pl.pallas_call(
        head_kernel,
        out_shape=jax.ShapeDtypeStruct((N, NC), jnp.float32),
        grid=(1,),
        in_specs=[
            pl.BlockSpec((N, D), lambda i: (0, 0)),
            pl.BlockSpec((1, D), lambda i: (0, 0)),
            pl.BlockSpec((1, D), lambda i: (0, 0)),
            pl.BlockSpec((D, NC), lambda i: (0, 0)),
            pl.BlockSpec((1, NC), lambda i: (0, 0)),
        ],
        out_specs=pl.BlockSpec((N, NC), lambda i: (0, 0)),
    )(cls_tok, hp["ln_g"], hp["ln_b"], hp["w"], hp["b"])


# ------------------------------ one-time parameter prep --------------------------- #
def prepare_vit_params(raw, *, heads):
    """Hoisted weight transposes, bf16 casts, and folding of 1/sqrt(hd) into Wq/bq."""
    bf16, f32 = jnp.bfloat16, jnp.float32
    row = lambda v: v.reshape(1, -1).astype(f32)
    D = raw["proj_w"].shape[0]
    hd = D // heads
    qk_scale = 1.0 / (hd ** 0.5)

    embed = dict(
        proj_w=raw["proj_w"].T.astype(bf16),                     # (patch_dim, D)
        proj_b=row(raw["proj_b"]),
        cls=raw["cls_token"].reshape(1, D).astype(f32),
        pos=raw["pos_embedding"].reshape(-1, D).astype(f32),     # (S, D)
    )

    layers = []
    for lr in raw["layers"]:
        wqkv = lr["in_proj_weight"]                              # (3D, D)
        bqkv = lr["in_proj_bias"]
        layers.append(dict(
            ln1_g=row(lr["ln1_g"]), ln1_b=row(lr["ln1_b"]),
            wq=(wqkv[:D] * qk_scale).T.astype(bf16),             # (D, D), scale folded
            bq=row(bqkv[:D] * qk_scale),
            wkv=wqkv[D:].T.astype(bf16),                         # (D, 2D)
            bkv=row(bqkv[D:]),
            wo=lr["out_proj_weight"].T.astype(bf16),             # (D, D)
            bo=row(lr["out_proj_bias"]),
            ln2_g=row(lr["ln2_g"]), ln2_b=row(lr["ln2_b"]),
            w1=lr["w1"].T.astype(bf16), b1=row(lr["b1"]),        # (D, mlp)
            w2=lr["w2"].T.astype(bf16), b2=row(lr["b2"]),        # (mlp, D)
        ))

    head = dict(
        ln_g=row(raw["head_ln_g"]), ln_b=row(raw["head_ln_b"]),
        w=raw["head_w"].T.astype(bf16), b=row(raw["head_b"]),    # (D, num_classes)
    )
    return dict(embed=embed, layers=layers, head=head)


# ------------------------------------ ViT forward ---------------------------------- #
def vit_forward_pallas(x_img, prep, *, heads, patch_size, tq=128):
    N, C, H, W = x_img.shape
    ps = patch_size
    Hp, Wp = H // ps, W // ps
    P = Hp * Wp
    S = P + 1
    S_pad = _round_up(S, 8)

    # Patch extraction (torch.unfold + permute + reshape) is pure data layout -> XLA glue.
    patches = x_img.reshape(N, C, Hp, ps, Wp, ps).transpose(0, 2, 4, 1, 3, 5)
    patches = patches.reshape(N, P, C * ps * ps)

    x = patch_embed_pallas(patches, prep["embed"], s_pad=S_pad)  # (N, S_pad, D)
    for lp in prep["layers"]:
        x = encoder_layer_pallas(x, lp, heads=heads, seq_len=S, tq=tq)
    cls_tok = x[:, 0, :]                                         # (N, D) layout glue
    return head_pallas(cls_tok, prep["head"])


# -------------------------------- pure-JAX reference -------------------------------- #
def encoder_layer_ref(x, p, heads):
    D = x.shape[-1]
    hd = D // heads
    eps = 1e-5

    def ln(v, g, b):
        mu = jnp.mean(v, axis=-1, keepdims=True)
        var = jnp.mean((v - mu) ** 2, axis=-1, keepdims=True)
        return (v - mu) / jnp.sqrt(var + eps) * g + b

    n1 = ln(x, p["ln1_g"], p["ln1_b"])
    qkv = n1 @ p["in_proj_weight"].T + p["in_proj_bias"]
    q, k, v = jnp.split(qkv, 3, axis=-1)

    def split_heads(t):
        B, S, _ = t.shape
        return t.reshape(B, S, heads, hd).transpose(0, 2, 1, 3)

    qh, kh, vh = split_heads(q), split_heads(k), split_heads(v)
    s = jnp.einsum("bhqd,bhkd->bhqk", qh, kh) / jnp.sqrt(hd)
    pattn = jax.nn.softmax(s, axis=-1)
    o = jnp.einsum("bhqk,bhkd->bhqd", pattn, vh)
    o = o.transpose(0, 2, 1, 3).reshape(x.shape)
    attn = o @ p["out_proj_weight"].T + p["out_proj_bias"]

    x1 = x + attn
    n2 = ln(x1, p["ln2_g"], p["ln2_b"])
    h = jax.nn.gelu(n2 @ p["w1"].T + p["b1"], approximate=False)
    return x1 + h @ p["w2"].T + p["b2"]


def vit_forward_ref(x_img, raw, *, heads, patch_size):
    N, C, H, W = x_img.shape
    ps = patch_size
    Hp, Wp = H // ps, W // ps
    P = Hp * Wp
    D = raw["proj_w"].shape[0]
    patches = x_img.reshape(N, C, Hp, ps, Wp, ps).transpose(0, 2, 4, 1, 3, 5)
    patches = patches.reshape(N, P, C * ps * ps)
    x = patches @ raw["proj_w"].T + raw["proj_b"]
    cls = jnp.broadcast_to(raw["cls_token"], (N, 1, D))
    x = jnp.concatenate([cls, x], axis=1) + raw["pos_embedding"]
    for lr in raw["layers"]:
        x = encoder_layer_ref(x, lr, heads)
    c = x[:, 0]
    mu = jnp.mean(c, axis=-1, keepdims=True)
    var = jnp.mean((c - mu) ** 2, axis=-1, keepdims=True)
    ln = (c - mu) / jnp.sqrt(var + 1e-5) * raw["head_ln_g"] + raw["head_ln_b"]
    return ln @ raw["head_w"].T + raw["head_b"]


# ----------------------------------------- main ------------------------------------- #
if __name__ == "__main__":
    # Small ViT: image 16x16, 3 channels, patch 4 -> 16 patches (+cls = 17 tokens,
    # padded to 24), hidden 128 (lane-aligned), 4 heads (hd=32), mlp 256, 2 layers.
    image_size, C, ps = 16, 3, 4
    D, heads, mlp_dim, n_layers = 128, 4, 256, 2
    num_classes, N = 10, 2
    patch_dim = C * ps * ps
    num_patches = (image_size // ps) ** 2

    key = jax.random.PRNGKey(0)
    kit = iter(jax.random.split(key, 32))
    w = lambda shape: 0.05 * jax.random.normal(next(kit), shape, jnp.float32)

    raw = dict(
        proj_w=w((D, patch_dim)), proj_b=w((D,)),
        cls_token=jax.random.normal(next(kit), (1, 1, D), jnp.float32),
        pos_embedding=jax.random.normal(next(kit), (1, num_patches + 1, D), jnp.float32),
        layers=[dict(
            ln1_g=jnp.ones((D,), jnp.float32), ln1_b=jnp.zeros((D,), jnp.float32),
            in_proj_weight=w((3 * D, D)), in_proj_bias=w((3 * D,)),
            out_proj_weight=w((D, D)), out_proj_bias=w((D,)),
            ln2_g=jnp.ones((D,), jnp.float32), ln2_b=jnp.zeros((D,), jnp.float32),
            w1=w((mlp_dim, D)), b1=w((mlp_dim,)),
            w2=w((D, mlp_dim)), b2=w((D,)),
        ) for _ in range(n_layers)],
        head_ln_g=jnp.ones((D,), jnp.float32), head_ln_b=jnp.zeros((D,), jnp.float32),
        head_w=w((num_classes, D)), head_b=w((num_classes,)),
    )

    x_img = jax.random.normal(next(kit), (N, C, image_size, image_size), jnp.float32)

    prep = prepare_vit_params(raw, heads=heads)
    out = vit_forward_pallas(x_img, prep, heads=heads, patch_size=ps, tq=8)
    out = jax.block_until_ready(out)

    ref = vit_forward_ref(x_img, raw, heads=heads, patch_size=ps)
    assert out.shape == (N, num_classes)
    err = float(jnp.max(jnp.abs(out - ref)))
    assert jnp.allclose(out, ref, atol=5e-2, rtol=5e-2), f"max abs diff {err}"

    print("KERNEL_OK")
</pallas_src>

<mosaic_0001>
module attributes {stable_mosaic.version = 11 : i64} {
  func.func @patch_embed_kernel(%arg0: i32, %arg1: memref<1x16x48xf32, #tpu.memory_space<vmem>>, %arg2: memref<48x128xbf16, #tpu.memory_space<vmem>>, %arg3: memref<1x128xf32, #tpu.memory_space<vmem>>, %arg4: memref<1x128xf32, #tpu.memory_space<vmem>>, %arg5: memref<17x128xf32, #tpu.memory_space<vmem>>, %arg6: memref<1x24x128xf32, #tpu.memory_space<vmem>>) attributes {dimension_semantics = [#tpu.dimension_semantics<parallel>], iteration_bounds = array<i64: 2>, scalar_prefetch = 0 : i64, scratch_operands = 0 : i64, tpu.core_type = #tpu.core_type<tc>, window_params = [{transform_indices = @transform_0, window_bounds = array<i64: 1, 16, 48>}, {pipeline_mode = #tpu.pipeline_mode<synchronous>, transform_indices = @transform_1, window_bounds = array<i64: 48, 128>}, {pipeline_mode = #tpu.pipeline_mode<synchronous>, transform_indices = @transform_2, window_bounds = array<i64: 1, 128>}, {pipeline_mode = #tpu.pipeline_mode<synchronous>, transform_indices = @transform_3, window_bounds = array<i64: 1, 128>}, {pipeline_mode = #tpu.pipeline_mode<synchronous>, transform_indices = @transform_4, window_bounds = array<i64: 17, 128>}, {transform_indices = @transform_5, window_bounds = array<i64: 1, 24, 128>}]} {
    %c0 = arith.constant 0 : index
    %c0_0 = arith.constant 0 : index
    %c0_1 = arith.constant 0 : index
    %0 = vector.load %arg1[%c0, %c0_0, %c0_1] : memref<1x16x48xf32, #tpu.memory_space<vmem>>, vector<1x16x48xf32>
    %1 = vector.shape_cast %0 : vector<1x16x48xf32> to vector<16x48xf32>
    %2 = arith.truncf %1 : vector<16x48xf32> to vector<16x48xbf16>
    %c0_2 = arith.constant 0 : index
    %c0_3 = arith.constant 0 : index
    %3 = vector.load %arg2[%c0_2, %c0_3] : memref<48x128xbf16, #tpu.memory_space<vmem>>, vector<48x128xbf16>
    %cst = arith.constant dense<0.000000e+00> : vector<16x128xf32>
    %4 = tpu.matmul %2, %3, %cst {dimension_numbers = #tpu.dot_dimension_numbers<[1], [0], [0], [1], [0, 0, 1, 1], [], []>} : vector<16x48xbf16>, vector<48x128xbf16>, vector<16x128xf32> -> vector<16x128xf32>
    %c0_4 = arith.constant 0 : index
    %c0_5 = arith.constant 0 : index
    %5 = vector.load %arg3[%c0_4, %c0_5] : memref<1x128xf32, #tpu.memory_space<vmem>>, vector<1x128xf32>
    %6 = vector.shape_cast %5 : vector<1x128xf32> to vector<128xf32>
    %7 = vector.shape_cast %6 : vector<128xf32> to vector<1x128xf32>
    %8 = vector.broadcast %7 : vector<1x128xf32> to vector<16x128xf32>
    %9 = arith.addf %4, %8 : vector<16x128xf32>
    %c0_6 = arith.constant 0 : index
    %c0_7 = arith.constant 0 : index
    %10 = vector.load %arg4[%c0_6, %c0_7] : memref<1x128xf32, #tpu.memory_space<vmem>>, vector<1x128xf32>
    %c0_8 = arith.constant 0 : index
    %c0_9 = arith.constant 0 : index
    %11 = vector.load %arg5[%c0_8, %c0_9] : memref<17x128xf32, #tpu.memory_space<vmem>>, vector<1x128xf32>
    %12 = arith.addf %10, %11 : vector<1x128xf32>
    %c0_10 = arith.constant 0 : index
    %c0_11 = arith.constant 0 : index
    %c0_12 = arith.constant 0 : index
    %13 = vector.load %arg6[%c0_10, %c0_11, %c0_12] : memref<1x24x128xf32, #tpu.memory_space<vmem>>, vector<1x1x128xf32>
    %14 = vector.shape_cast %13 : vector<1x1x128xf32> to vector<1x128xf32>
    %15 = vector.shape_cast %12 : vector<1x128xf32> to vector<1x1x128xf32>
    tpu.vector_store %arg6[%c0_10, %c0_11, %c0_12], %15 {strides = array<i32>} : memref<1x24x128xf32, #tpu.memory_space<vmem>>, vector<1x1x128xf32>,
    %c1 = arith.constant 1 : index
    %c0_13 = arith.constant 0 : index
    %16 = vector.load %arg5[%c1, %c0_13] : memref<17x128xf32, #tpu.memory_space<vmem>>, vector<16x128xf32>
    %17 = arith.addf %9, %16 : vector<16x128xf32>
    %c0_14 = arith.constant 0 : index
    %c1_15 = arith.constant 1 : index
    %c0_16 = arith.constant 0 : index
    %18 = vector.load %arg6[%c0_14, %c1_15, %c0_16] : memref<1x24x128xf32, #tpu.memory_space<vmem>>, vector<1x16x128xf32>
    %19 = vector.shape_cast %18 : vector<1x16x128xf32> to vector<16x128xf32>
    %20 = vector.shape_cast %17 : vector<16x128xf32> to vector<1x16x128xf32>
    tpu.vector_store %arg6[%c0_14, %c1_15, %c0_16], %20 {strides = array<i32>} : memref<1x24x128xf32, #tpu.memory_space<vmem>>, vector<1x16x128xf32>,
    %cst_17 = arith.constant 0.000000e+00 : f32
    %21 = vector.broadcast %cst_17 : f32 to vector<7x128xf32>
    %c0_18 = arith.constant 0 : index
    %c17 = arith.constant 17 : index
    %c0_19 = arith.constant 0 : index
    %22 = vector.load %arg6[%c0_18, %c17, %c0_19] : memref<1x24x128xf32, #tpu.memory_space<vmem>>, vector<1x7x128xf32>
    %23 = vector.shape_cast %22 : vector<1x7x128xf32> to vector<7x128xf32>
    %24 = vector.shape_cast %21 : vector<7x128xf32> to vector<1x7x128xf32>
    tpu.vector_store %arg6[%c0_18, %c17, %c0_19], %24 {strides = array<i32>} : memref<1x24x128xf32, #tpu.memory_space<vmem>>, vector<1x7x128xf32>,
    return
  }
  func.func @transform_0(%arg0: i32) -> (i32, i32, i32) {
    %c0_i32 = arith.constant 0 : i32
    %c0_i32_0 = arith.constant 0 : i32
    %c0_i32_1 = arith.constant 0 : i32
    return %arg0, %c0_i32, %c0_i32_0 : i32, i32, i32
  }
  func.func @transform_1(%arg0: i32) -> (i32, i32) {
    %c0_i32 = arith.constant 0 : i32
    %c0_i32_0 = arith.constant 0 : i32
    %c0_i32_1 = arith.constant 0 : i32
    return %c0_i32, %c0_i32_0 : i32, i32
  }
  func.func @transform_2(%arg0: i32) -> (i32, i32) {
    %c0_i32 = arith.constant 0 : i32
    %c0_i32_0 = arith.constant 0 : i32
    %c0_i32_1 = arith.constant 0 : i32
    return %c0_i32, %c0_i32_0 : i32, i32
  }
  func.func @transform_3(%arg0: i32) -> (i32, i32) {
    %c0_i32 = arith.constant 0 : i32
    %c0_i32_0 = arith.constant 0 : i32
    %c0_i32_1 = arith.constant 0 : i32
    return %c0_i32, %c0_i32_0 : i32, i32
  }
  func.func @transform_4(%arg0: i32) -> (i32, i32) {
    %c0_i32 = arith.constant 0 : i32
    %c0_i32_0 = arith.constant 0 : i32
    %c0_i32_1 = arith.constant 0 : i32
    return %c0_i32, %c0_i32_0 : i32, i32
  }
  func.func @transform_5(%arg0: i32) -> (i32, i32, i32) {
    %c0_i32 = arith.constant 0 : i32
    %c0_i32_0 = arith.constant 0 : i32
    %c0_i32_1 = arith.constant 0 : i32
    return %arg0, %c0_i32, %c0_i32_0 : i32, i32, i32
  }
}

</mosaic_0001>

<bundles_post_ra>
// kernel: tpu_custom_call.1
= control target key start
LH: loop header
LB: loop body
LE: loop exit
PB: predicated region body
PF: predicated region fallthrough
CT: control target
= control target key end

     0   :  { %10 = vsyncpa [#allocation3], 0  ;;  %s1038_s0 = inlined_call_operand.hbm [shape: f32[2,16,48], index: 0, kind: input, shape index: {}]   ;;  %s1039_s1 = inlined_call_operand.hbm [shape: bf16[48,128], index: 1, kind: input, shape index: {}]   ;;  %s1040_s2 = inlined_call_operand.vmem [shape: f32[1,128], index: 2, kind: input, shape index: {}]   ;;  %s1041_s3 = inlined_call_operand.vmem [shape: f32[1,128], index: 3, kind: input, shape index: {}]   ;;  %s1042_s4 = inlined_call_operand.hbm [shape: f32[17,128], index: 4, kind: input, shape index: {}]   ;;  %s1043_s5 = inlined_call_operand.hbm [shape: f32[2,24,128], index: 5, kind: output, shape index: {}]  }
   0x1   :  { %12 = vsyncpa [#allocation3 + $0x1], 0 }
   0x2   :  { %13 = vsyncpa [#allocation6], 0 }
   0x3   :  { %14 = vsyncpa [#allocation4], 0 }
   0x4   :  { %16 = vsyncpa [#allocation4 + $0x1], 0  ;;  %s784_s18 = smov 0   ;;  %s786_s19 = smov 0  }
   0x5   :  { %s788_s20 = smov 0   ;;  %s790_s21 = smov 0  }
   0x6 LB: > { %s805_s22 = sadd.s32 4294967295, %s740_s21   ;;  %s469_s23 = sadd.s32 4294967294, %s740_s21   ;;  %s740_s21 = sphi %s790_s21, %s1063_s21   ;;  %s736_s20 = sphi %s788_s20, %s1062_s20   ;;  %s732_s19 = sphi %s786_s19, %s1061_s19   ;;  %s728_s18 = sphi %s784_s18, %s1060_s18  }
   0x7   : > { %p42_p0 = scmp.ne.s32.totalorder %s732_s19, %s728_s18  ;;  %p1044_p1 = scmp.eq.s32.totalorder %s805_s22, 0 }
   0x8   : > { %p156_p3 = scmp.eq.s32.totalorder %s469_s23, 1  ;;  %p470_p5 = scmp.ge.s32.totalorder %s740_s21, 1 }
   0x9   : > { %p814_p4 = por %p1044_p1, %p42_p0  ;;  %p163_p7 = scmp.lt.s32.totalorder %s740_s21, 3 }
   0xa   : > { %p819_p6 = por %p156_p3, %p42_p0  ;;  %s742_s27 = smov [#allocation5]  }
   0xb   : > { %s1047_s24 = scalar_select %p814_p4, 1, 0 }
   0xc   : > { %s1048_s25 = scalar_select %p819_p6, 1, 0 }
   0xd   : > { %p824_p8 = pnand %p470_p5, %p163_p7  ;;  %s175_s28 = sshll.u32 %s742_s27, 4  ;;  %s828_s28 = int_to_ptr.vmem [resolvable:$true] %s175_s28 }
   0xe   : > { %s743_s30 = smov [#allocation7]   ;;  %s584_s9 = scalar_lea.hbm %s1039_s1, 384 }
   0xf   : > { %p518_p9 = pneg %p824_p8  ;;  %s194_s6 = sshll.u32 %s743_s30, 4  ;;  %s839_s6 = int_to_ptr.vmem [resolvable:$true] %s194_s6 }
  0x10   : > { %p585_p12 = scmp.ne.s32.totalorder %s1039_s1, %s584_s9  ;;  %p591_p5 = scmp.lt.u32.totalorder %s584_s9, %s1039_s1 }
  0x11   : > { %p835_p11 = pnand %p518_p9, %p1044_p1 }
  0x13   : > { %p586_p13 = pneg %p835_p11 }
  0x15   : > { %p587_p0 = pnand %p586_p13, %p585_p12 }
  0x17   : > { %p588_p3 = pneg %p587_p0 }
  0x19   : > { %p593_p7 = pnand %p591_p5, %p588_p3 }
  0x1b   : > { %596 = shalt.err (!%p593_p7)
}
  0x1c   : > { %s597_s14 = scalar_lea.vmem %s828_s28, 384  ;;  %p605_p2 = scmp.lt.s32.totalorder %s828_s28, %s828_s28 }
  0x1d   : > { %p598_p9 = scmp.ne.s32.totalorder %s828_s28, %s597_s14  ;;  %p606_p12 = scmp.lt.s32.totalorder %s597_s14, %s597_s14 }
  0x1f   : > { %p600_p10 = pnand %p598_p9, %p586_p13  ;;  %p607_p0 = por %p606_p12, %p605_p2 }
  0x21   : > { %p601_p1 = pneg %p600_p10 }
  0x23   : > { %p608_p6 = pnand %p607_p0, %p601_p1 }
  0x25   : > { %611 = shalt.err (!%p608_p6)
}
  0x26   : > { %s744_s15 = smov 64   ;;  %s745_s16 = smov 4  }
  0x27   : > { %521 = dma.hbm_to_vmem [thread:$0]  (!%p835_p11), %s1039_s1, 384, %s828_s28, [#allocation6], %s744_s15, %s744_s15, %s745_s16  }
  0x28   : > { %s612_s7 = scalar_lea.hbm %s1042_s4, 384 }
  0x29   : > { %p613_p2 = scmp.ne.s32.totalorder %s1042_s4, %s612_s7  ;;  %p619_p10 = scmp.lt.u32.totalorder %s612_s7, %s1042_s4 }
  0x2b   : > { %p615_p1 = pnand %p613_p2, %p586_p13 }
  0x2d   : > { %p616_p6 = pneg %p615_p1 }
  0x2f   : > { %p621_p3 = pnand %p619_p10, %p616_p6 }
  0x31   : > { %624 = shalt.err (!%p621_p3)
}
  0x32   : > { %s625_s28 = scalar_lea.vmem %s839_s6, 384  ;;  %p633_p12 = scmp.lt.s32.totalorder %s839_s6, %s839_s6 }
  0x33   : > { %p626_p5 = scmp.ne.s32.totalorder %s839_s6, %s625_s28  ;;  %p634_p0 = scmp.lt.s32.totalorder %s625_s28, %s625_s28 }
  0x35   : > { %p628_p7 = pnand %p626_p5, %p586_p13  ;;  %p635_p2 = por %p634_p0, %p633_p12 }
  0x37   : > { %p629_p9 = pneg %p628_p7 }
  0x39   : > { %p636_p1 = pnand %p635_p2, %p629_p9 }
  0x3b   : > { %639 = shalt.err (!%p636_p1)
}
  0x3c   : > { %s746_s12 = smov 128   ;;  %s747_s13 = smov 8  }
  0x3d   : > { %524 = dma.hbm_to_vmem [thread:$0]  (!%p835_p11), %s1042_s4, 384, %s839_s6, [#allocation6], %s746_s12, %s746_s12, %s747_s13  }
  0x3e   : > { %s897_s16 = sadd.s32 1, %s740_s21   ;;  %s29_s23 = sadd.s32 1, %s736_s20 }
  0x3f   : > { %s26_s17 = ssub.s32 %s740_s21, %s897_s16  ;;  %p36_p6 = scmp.ne.s32.totalorder %s736_s20, %s732_s19 }
  0x40   : > { %p27_p13 = scmp.eq.s32.totalorder %s26_s17, 0  ;;  %p37_p10 = scmp.eq.s32.totalorder %s740_s21, 0 }
  0x41   : > { %p1051_p5 = scmp.eq.s32.totalorder %s805_s22, 1  ;;  %p535_p9 = scmp.lt.s32.totalorder %s740_s21, 2 }
  0x42   : > { %s906_s27 = scalar_select %p27_p13, %s736_s20, %s29_s23  }
  0x43   : > { %p38_p3 = por %p37_p10, %p36_p6  ;;  %p910_p7 = por %p1051_p5, %p36_p6 }
  0x44   : > { %s208_s30 = sand.u32 1, %s736_s20   ;;  %s489_s6 = sshll.u32 %s740_s21, 8 }
  0x45   : > { %s1052_s29 = scalar_select %p910_p7, 1, 0 }
  0x46   : > { %s474_s7 = sshll.u32 %s208_s30, 4  ;;  %s920_s10 = scalar_lea.hbm %s1038_s0, %s489_s6 }
  0x47   : > { %s212_s11 = scalar_lea.vmem [#allocation2], %s474_s7  ;;  %p924_p11 = pnand %p535_p9, %p38_p3 }
  0x48   : > { %s219_s28 = sshll.u32 %s212_s11, 4  ;;  %s928_s15 = scalar_lea.sflag [#allocation3], %s208_s30  ;;  %s922_s28 = int_to_ptr.vmem [resolvable:$true] %s219_s28 }
  0x49   : > { %s640_s17 = scalar_lea.hbm %s920_s10, 256  ;;  %p642_p0 = pneg %p924_p11 }
  0x4a   : > { %p641_p12 = scmp.ne.s32.totalorder %s920_s10, %s640_s17  ;;  %s645_s6 = scalar_lea.hbm %s1038_s0, 512 }
  0x4b   : > { %p646_p13 = scmp.lt.u32.totalorder %s920_s10, %s1038_s0  ;;  %p647_p6 = scmp.lt.u32.totalorder %s645_s6, %s640_s17 }
  0x4c   : > { %p643_p2 = pnand %p642_p0, %p641_p12  ;;  %p649_p3 = scmp.lt.u32.totalorder %s640_s17, %s920_s10 }
  0x4d   : > { %p648_p10 = por %p647_p6, %p646_p13 }
  0x4e   : > { %p644_p1 = pneg %p643_p2 }
  0x4f   : > { %p650_p5 = por %p649_p3, %p648_p10 }
  0x51   : > { %p651_p9 = pnand %p650_p5, %p644_p1 }
  0x53   : > { %654 = shalt.err (!%p651_p9)
}
  0x54   : > { %s655_s30 = scalar_lea.vmem %s922_s28, 256  ;;  %s748_s11 = smov [#allocation2]  }
  0x55   : > { %p656_p12 = scmp.ne.s32.totalorder %s922_s28, %s655_s30  ;;  %s660_s23 = sshll.u32 %s748_s11, 4  ;;  %s661_s23 = int_to_ptr.vmem [resolvable:$false] %s660_s23 }
  0x56   : > { %s662_s7 = scalar_lea.vmem %s661_s23, 512  ;;  %p663_p4 = scmp.lt.s32.totalorder %s922_s28, %s661_s23 }
  0x57   : > { %p658_p2 = pnand %p656_p12, %p642_p0  ;;  %p664_p13 = scmp.lt.s32.totalorder %s662_s7, %s655_s30 }
  0x59   : > { %p659_p7 = pneg %p658_p2  ;;  %p665_p6 = por %p664_p13, %p663_p4 }
  0x5b   : > { %p666_p10 = pnand %p665_p6, %p659_p7 }
  0x5d   : > { %669 = shalt.err (!%p666_p10)
}
  0x5e   : > { %528 = dma.hbm_to_vmem [thread:$0]  (!%p924_p11), %s920_s10, 256, %s922_s28, %s928_s15, %s746_s12, %s746_s12, %s747_s13  }
  0x5f   : > { %231 = sbr.rel (%p824_p8) target bundleno = 352 (0x160), region = 40  ;;  %s962_s17 = sand.u32 (!%p824_p8), 1, %s732_s19  }
  0x60   : > { %s478_s6 = sshll.u32 (!%p824_p8), %s962_s17, 4  ;;  %s234_s8 = scalar_lea.sflag (!%p824_p8), [#allocation3], %s962_s17 }
  0x61   : > { %s237_s9 = scalar_lea.vmem (!%p824_p8), [#allocation2], %s478_s6  ;;  %p1054_p4 = scmp.ne.s32.totalorder (!%p824_p8), %s1047_s24, 0 }
  0x66   : > { %715 = dma.done.wait (%p1054_p4), %s234_s8, 256  }
  0x67   : > { %717 = vsyncadd (%p1054_p4), %s234_s8, 4294967040  ;;  %p1055_p7 = scmp.eq.s32.totalorder %s805_s22, 0 }
  0x69   : > { %719 = dma.done.wait (%p1055_p7), [#allocation6], 768   ;;  %p1056_p11 = pmov %p1055_p7 }
  0x6a   : > { %s504_s26 = smul.u32 24, %s962_s17  ;;  %v749_v0 = vmov 0.0   ;;  %vm750_vm0 = vmmov 0   ;;  %v581_v1 = vld [vmem:[#allocation5] sm:$0xff]   ;;  %v582_v2 = vld [vmem:[#allocation5 + $0x8] sm:$0xff]   ;;  %v583_v3 = vld [vmem:[#allocation5 + $0x10] sm:$0xff]  }
  0x6b   : > { %721 = vsyncadd (%p1056_p11), [#allocation6], 4294966528  ;;  %494 = vmatprep.subr.bf16.mxu0 %v749_v0  ;;  %500 = vmatprep.mubr.msk.bf16.mxu0 %vm750_vm0, %v749_v0  ;;  %v273_v4 = vld [vmem:[%s237_s9] sm:$0xff]  ;;  %v274_v5 = vld [vmem:[%s237_s9 + $0x8] sm:$0xff]  ;;  %vm307_vm1 = vcmask 392192   ;;  %s505_s14 = smul.u32 384, %s805_s22 }
  0x6c   : > { %s975_s12 = scalar_lea.vmem [#allocation8], %s504_s26  ;;  %495 = vmatpush3.bf16.msra.mxu0 %v581_v1  ;;  %v275_v6 = vpack.c.bf16 %v274_v5, %v273_v4  ;;  %v352_v7 = vld [vmem:[%s1041_s3] sm:$0x1]  ;;  %v353_v8 = vld [vmem:[#allocation7] sm:$0x1]  ;;  %v357_v16 = vld [vmem:[#allocation7 + $0x9] sm:$0xff] }
  0x6d   : > { %362 = vst [vmem:[%s975_s12 + $0x11] sm:$0x7f] %v749_v0  ;;  %496 = vmatprep.subr.bf16.mxu0 %v749_v0  ;;  %v354_v9 = vadd.f32 %v353_v8, %v352_v7  ;;  %v481_v10 = vld [vmem:[%s1040_s2] ss:$0 sm:$0xff]  ;;  %s377_s15 = sshll.u32 %s975_s12, 4  ;;  %s990_s23 = scalar_lea.hbm %s1043_s5, %s505_s14  ;;  %s992_s15 = int_to_ptr.vmem [resolvable:$true] %s377_s15 }
  0x6e   : > { %v356_v12 = vld [vmem:[#allocation7 + $0x1] sm:$0xff]  ;;  %s364_s22 = scalar_lea.sflag [#allocation4], %s962_s17  ;;  %s670_s7 = scalar_lea.vmem %s992_s15, 384 }
  0x6f   : > { %355 = vst [vmem:[%s975_s12] sm:$0x1] %v354_v9  ;;  %p671_p8 = scmp.ne.s32.totalorder %s992_s15, %s670_s7  ;;  %p1057_p0 = scmp.ne.s32.totalorder %s1052_s29, 0 }
  0x70   : > { %497 = vmatpush3.bf16.msra.mxu0 %v582_v2  ;;  %s751_s6 = smov [#allocation8]  }
  0x71   : > { %498 = vmatprep.subr.bf16.mxu0 %v749_v0  ;;  %p672_p1 = pnand %p671_p8, %p1057_p0  ;;  %s674_s8 = sshll.u32 %s751_s6, 4  ;;  %s675_s8 = int_to_ptr.vmem [resolvable:$false] %s674_s8 }
  0x72   : > { %s676_s9 = scalar_lea.vmem %s675_s8, 768  ;;  %p677_p5 = scmp.lt.s32.totalorder %s992_s15, %s675_s8 }
  0x73   : > { %p673_p3 = pneg %p672_p1  ;;  %p678_p9 = scmp.lt.s32.totalorder %s676_s9, %s670_s7 }
  0x74   : > { %499 = vmatpush3.bf16.msra.mxu0 %v583_v3 }
  0x75   : > { %p679_p12 = por %p678_p9, %p677_p5 }
  0x77   : > { %501 = vmatmul.mubr.msk.bf16.vlgmr.msra.gmra.mrb[0].mxu0 %vm307_vm1, %v275_v6  ;;  %p680_p2 = pnand %p679_p12, %p673_p3 }
 0x14a   : > { %v345_v11 = vpop.f32.mrb[0].mxu0 }
 0x14b   : > { %v346_v13 = vadd.f32 %v481_v10, %v345_v11  ;;  %v502_v14 = vpop.f32.mrb[1].mxu0 }
 0x14c   : > { %v348_v15 = vpop.f32.mrb[2].mxu0 }
 0x14d   : > { %v358_v17 = vadd.f32 %v356_v12, %v346_v13  ;;  %v349_v18 = vadd.f32 %v481_v10, %v348_v15  ;;  %v503_v19 = vpop.f32.mrb[3].mxu0 }
 0x14f   : > { %360 = vst [vmem:[%s975_s12 + $0x1] sm:$0xff] %v358_v17  ;;  %v359_v20 = vadd.f32 %v357_v16, %v349_v18 }
 0x151   : > { %361 = vst [vmem:[%s975_s12 + $0x9] sm:$0xff] %v359_v20 }
 0x152   : > { %683 = shalt.err (!%p680_p2)
}
 0x153   : > { %s684_s26 = scalar_lea.hbm %s990_s23, 384  ;;  %s688_s13 = scalar_lea.hbm %s1043_s5, 768 }
 0x154   : > { %p685_p13 = scmp.ne.s32.totalorder %s990_s23, %s684_s26  ;;  %p689_p4 = scmp.lt.u32.totalorder %s990_s23, %s1043_s5 }
 0x155   : > { %p690_p7 = scmp.lt.u32.totalorder %s688_s13, %s684_s26  ;;  %p692_p8 = scmp.lt.u32.totalorder %s684_s26, %s990_s23 }
 0x156   : > { %p686_p6 = pnand %p685_p13, %p1057_p0 }
 0x157   : > { %p691_p11 = por %p690_p7, %p689_p4 }
 0x158   : > { %p687_p10 = pneg %p686_p6 }
 0x159   : > { %p693_p1 = por %p692_p8, %p691_p11 }
 0x15b   : > { %p694_p3 = pnand %p693_p1, %p687_p10 }
 0x15d   : > { %697 = shalt.err (!%p694_p3)
}
 0x15e   : > { %s752_s14 = smov 128   ;;  %s753_s30 = smov 8  }
 0x15f   : > { %516 = dma.vmem_to_hbm [thread:$0]  (%p1057_p0), %s992_s15, 384, %s990_s23, %s364_s22, %s752_s14, %s752_s14, %s753_s30  }
 0x160 PF: > { %s392_s11 = sand.u32 1, %s728_s18   ;;  %p1058_p5 = scmp.ne.s32.totalorder %s1048_s25, 0 }
 0x161   : > { %p1059_p9 = scmp.ge.s32.totalorder %s740_s21, 2  ;;  %s393_s7 = scalar_lea.sflag [#allocation4], %s392_s11 }
 0x163   : > { %p530_p12 = pnand %p1059_p9, %p1058_p5 }
 0x165   : > { %723 = dma.done.wait (!%p530_p12), %s393_s7, 384  }
 0x166   : > { %725 = vsyncadd (!%p530_p12), %s393_s7, 4294966912  ;;  %p19_p2 = scmp.ge.s32.totalorder %s897_s16, 4   ;;  %s1060_s18 = smov %s732_s19 }
 0x167   : > { %s1061_s19 = smov %s736_s20  ;;  %s1062_s20 = smov %s906_s27 }
 0x168   : > { %s1063_s21 = smov %s897_s16  ;;  %21 = sbr.rel (!%p19_p2) target bundleno = 6 (0x6), region = 93 }
 0x16f   :  { %398 = vsyncpa [#allocation3], 1 }
 0x170   :  { %400 = vsyncpa [#allocation3 + $0x1], 1 }
 0x171   :  { %401 = vsyncpa [#allocation6], 1 }
 0x172   :  { %402 = vsyncpa [#allocation4], 1 }
 0x173   :  { %404 = vsyncpa [#allocation4 + $0x1], 1 }

</bundles_post_ra>
